<compile_context>
chip_gen: v7x
topology: tpu7x:2x2x1
jax: 0.10.0
libtpu: 0.0.40
codegen_flags: <defaults>
</compile_context>

<pallas_src>
import jax
import jax.numpy as jnp
from jax.experimental import pallas as pl
from jax.experimental.pallas import tpu as pltpu


def _make_wlp_kernel(num_layers):
    def kernel(w_ref, *refs):
        # w_ref : (NL,) f32 in SMEM  -- pre-normalized layer weights
        # refs  : NL input tiles (t, C) followed by 1 output tile (t, C)
        x_refs = refs[:num_layers]
        o_ref = refs[num_layers]
        # Unrolled MAC chain; NL is small (e.g. 9).  The f32 accumulator stays
        # in vregs (single elementwise pass per vreg, no VMEM round-trips).
        acc = w_ref[0] * x_refs[0][...].astype(jnp.float32)
        for i in range(1, num_layers):
            acc = acc + w_ref[i] * x_refs[i][...].astype(jnp.float32)
        o_ref[...] = acc.astype(o_ref.dtype)
    return kernel


def _vmem_budget(num_layers):
    """Generation-aware per-layer block byte budget and physical VMEM size."""
    vmem_bytes = 64 << 20  # conservative default (v7x per-TensorCore VMEM)
    try:
        info = pltpu.get_tpu_info()
        vmem_bytes = int(getattr(info, "vmem_capacity_bytes", vmem_bytes))
    except Exception:
        pass
    # Live blocks with default double-buffering: 2 per input + 2 for the output.
    live_blocks = 2 * num_layers + 2
    # Spend ~60% of physical VMEM on pipeline buffers; leave headroom for
    # Mosaic scratch / temporaries.
    per_block = int(0.6 * vmem_bytes) // live_blocks
    # Floor: amortize the ~0.35us per-step overhead.  Cap: 3 MiB/block is past
    # the ~85% HBM-roofline knee on v6e; 64 MiB chips (v7x) naturally land
    # around ~1.9 MiB/block.
    floor = min(512 * 1024, max(64 * 1024, int(0.5 * vmem_bytes) // live_blocks))
    per_block = max(floor, min(per_block, 3 * 1024 * 1024))
    return per_block, vmem_bytes, live_blocks


def _choose_layout(B, S, H):
    """Pick a lane-dense 2D view for the purely elementwise op."""
    rows = B * S
    n = rows * H
    if H % 128 == 0:
        return (rows, H)           # already lane-dense along H
    if n % 128 == 0:
        return (n // 128, 128)     # flatten + re-chunk into 128-lane columns
    # Fallback: full-H blocks (last dim equals the array dim -> always legal);
    # stores are masked but correct.
    return (rows, H)


def _pick_row_tile(rows, row_bytes, budget_bytes, sub):
    """Largest row tile that is a multiple of `sub` sublanes, fits the per-block
    budget, and leaves >= 2 grid steps (v7x megacore sharding).  Does NOT need
    to divide `rows`: the grid uses cdiv and the last block is ragged/masked."""
    if rows <= sub:
        return rows                              # single full-dim block
    max_rows = max(sub, (budget_bytes // max(1, row_bytes)) // sub * sub)
    t = min(max_rows, (rows // sub) * sub)
    if pl.cdiv(rows, t) < 2:
        half = ((rows + 1) // 2 + sub - 1) // sub * sub
        t = max(sub, min(t, half))
    return t


def weighted_layer_pooling(features, layer_weights, layer_start=4):
    """features: list/tuple of (B, S, H) arrays (embedding output + hidden layers)."""
    selected = list(features[layer_start:])
    num_layers = len(selected)
    B, S, H = selected[0].shape
    dtype = selected[0].dtype
    itemsize = jnp.dtype(dtype).itemsize

    # Lane-dense 2D view (free contiguous reshape; op is purely elementwise).
    rows, cols = _choose_layout(B, S, H)
    layers2d = [jnp.reshape(f, (rows, cols)) for f in selected]

    # Pre-normalize weights -> kernel is a pure multiply-accumulate.
    w = layer_weights.astype(jnp.float32)
    w_norm = w / jnp.sum(w)

    per_block_budget, vmem_bytes, live_blocks = _vmem_budget(num_layers)
    sub = 8 * max(1, 4 // itemsize)              # sublane multiple for the dtype
    t_rows = _pick_row_tile(rows, cols * itemsize, per_block_budget, sub)
    grid = (pl.cdiv(rows, t_rows),)

    # Explicit scoped-VMEM limit matching what the pipeline actually needs.
    block_bytes = t_rows * cols * itemsize
    live_bytes = live_blocks * block_bytes
    vmem_limit = int(min(max(vmem_bytes - (8 << 20), 16 << 20),
                         max(live_bytes + (8 << 20), 32 << 20)))

    tile_spec = pl.BlockSpec((t_rows, cols), lambda i: (i, 0))
    out2d = pl.pallas_call(
        _make_wlp_kernel(num_layers),
        out_shape=jax.ShapeDtypeStruct((rows, cols), dtype),
        grid=grid,
        in_specs=[pl.BlockSpec(memory_space=pltpu.MemorySpace.SMEM)]
        + [tile_spec] * num_layers,
        out_specs=pl.BlockSpec((t_rows, cols), lambda i: (i, 0)),
        compiler_params=pltpu.CompilerParams(
            dimension_semantics=("parallel",),
            vmem_limit_bytes=vmem_limit,
        ),
    )(w_norm, *layers2d)

    # TODO(synk): verify in a bundle dump that the 9-term MAC chain stays fused
    # (no VMEM round-trips of the f32 accumulator); restructure with fori_loop
    # over row sub-chunks only if it does not.
    return out2d.reshape(B, S, H)


if __name__ == "__main__":
    # Module config (matches the PyTorch __init__ default: ones weights)
    num_hidden_layers = 12
    layer_start = 4
    NL = num_hidden_layers + 1 - layer_start          # 9 selected layers
    layer_weights = jnp.ones((NL,), dtype=jnp.float32)

    def run_case(B, S, H, key):
        keys = jax.random.split(key, num_hidden_layers + 1)
        feats = [jax.random.normal(k, (B, S, H), dtype=jnp.float32) for k in keys]
        out = jax.block_until_ready(
            weighted_layer_pooling(feats, layer_weights, layer_start))
        # Reference (plain JAX) check of the exact forward semantics
        stacked = jnp.stack(feats)[layer_start:]
        wf = layer_weights.reshape(NL, 1, 1, 1)
        ref = (wf * stacked).sum(axis=0) / layer_weights.sum()
        assert out.shape == (B, S, H)
        assert jnp.allclose(out, ref, atol=1e-5, rtol=1e-5), f"mismatch at {(B, S, H)}"

    key = jax.random.PRNGKey(0)
    k0, k1, k2 = jax.random.split(key, 3)
    run_case(2, 8, 256, k0)    # production-like: H multiple of 128, lane-dense path
    run_case(2, 12, 96, k1)    # H < 128 but B*S*H % 128 == 0 -> flattened lane-dense path
    run_case(2, 8, 33, k2)     # awkward H -> full-H block fallback (masked stores)
    print("KERNEL_OK")
</pallas_src>

<mosaic_0001>
module attributes {stable_mosaic.version = 11 : i64} {
  func.func @kernel(%arg0: i32, %arg1: memref<9xf32, #tpu.memory_space<smem>>, %arg2: memref<8x256xf32, #tpu.memory_space<vmem>>, %arg3: memref<8x256xf32, #tpu.memory_space<vmem>>, %arg4: memref<8x256xf32, #tpu.memory_space<vmem>>, %arg5: memref<8x256xf32, #tpu.memory_space<vmem>>, %arg6: memref<8x256xf32, #tpu.memory_space<vmem>>, %arg7: memref<8x256xf32, #tpu.memory_space<vmem>>, %arg8: memref<8x256xf32, #tpu.memory_space<vmem>>, %arg9: memref<8x256xf32, #tpu.memory_space<vmem>>, %arg10: memref<8x256xf32, #tpu.memory_space<vmem>>, %arg11: memref<8x256xf32, #tpu.memory_space<vmem>>) attributes {dimension_semantics = [#tpu.dimension_semantics<parallel>], iteration_bounds = array<i64: 2>, scalar_prefetch = 0 : i64, scratch_operands = 0 : i64, tpu.core_type = #tpu.core_type<tc>, window_params = [{transform_indices = @transform_0, window_bounds = array<i64: 9>}, {transform_indices = @transform_1, window_bounds = array<i64: 8, 256>}, {transform_indices = @transform_2, window_bounds = array<i64: 8, 256>}, {transform_indices = @transform_3, window_bounds = array<i64: 8, 256>}, {transform_indices = @transform_4, window_bounds = array<i64: 8, 256>}, {transform_indices = @transform_5, window_bounds = array<i64: 8, 256>}, {transform_indices = @transform_6, window_bounds = array<i64: 8, 256>}, {transform_indices = @transform_7, window_bounds = array<i64: 8, 256>}, {transform_indices = @transform_8, window_bounds = array<i64: 8, 256>}, {transform_indices = @transform_9, window_bounds = array<i64: 8, 256>}, {transform_indices = @transform_10, window_bounds = array<i64: 8, 256>}]} {
    %c0 = arith.constant 0 : index
    %0 = memref.load %arg1[%c0] : memref<9xf32, #tpu.memory_space<smem>>
    %c0_0 = arith.constant 0 : index
    %c0_1 = arith.constant 0 : index
    %1 = vector.load %arg2[%c0_0, %c0_1] : memref<8x256xf32, #tpu.memory_space<vmem>>, vector<8x256xf32>
    %2 = vector.broadcast %0 : f32 to vector<8x256xf32>
    %3 = arith.mulf %2, %1 : vector<8x256xf32>
    %c1 = arith.constant 1 : index
    %4 = memref.load %arg1[%c1] : memref<9xf32, #tpu.memory_space<smem>>
    %c0_2 = arith.constant 0 : index
    %c0_3 = arith.constant 0 : index
    %5 = vector.load %arg3[%c0_2, %c0_3] : memref<8x256xf32, #tpu.memory_space<vmem>>, vector<8x256xf32>
    %6 = vector.broadcast %4 : f32 to vector<8x256xf32>
    %7 = arith.mulf %6, %5 : vector<8x256xf32>
    %8 = arith.addf %3, %7 : vector<8x256xf32>
    %c2 = arith.constant 2 : index
    %9 = memref.load %arg1[%c2] : memref<9xf32, #tpu.memory_space<smem>>
    %c0_4 = arith.constant 0 : index
    %c0_5 = arith.constant 0 : index
    %10 = vector.load %arg4[%c0_4, %c0_5] : memref<8x256xf32, #tpu.memory_space<vmem>>, vector<8x256xf32>
    %11 = vector.broadcast %9 : f32 to vector<8x256xf32>
    %12 = arith.mulf %11, %10 : vector<8x256xf32>
    %13 = arith.addf %8, %12 : vector<8x256xf32>
    %c3 = arith.constant 3 : index
    %14 = memref.load %arg1[%c3] : memref<9xf32, #tpu.memory_space<smem>>
    %c0_6 = arith.constant 0 : index
    %c0_7 = arith.constant 0 : index
    %15 = vector.load %arg5[%c0_6, %c0_7] : memref<8x256xf32, #tpu.memory_space<vmem>>, vector<8x256xf32>
    %16 = vector.broadcast %14 : f32 to vector<8x256xf32>
    %17 = arith.mulf %16, %15 : vector<8x256xf32>
    %18 = arith.addf %13, %17 : vector<8x256xf32>
    %c4 = arith.constant 4 : index
    %19 = memref.load %arg1[%c4] : memref<9xf32, #tpu.memory_space<smem>>
    %c0_8 = arith.constant 0 : index
    %c0_9 = arith.constant 0 : index
    %20 = vector.load %arg6[%c0_8, %c0_9] : memref<8x256xf32, #tpu.memory_space<vmem>>, vector<8x256xf32>
    %21 = vector.broadcast %19 : f32 to vector<8x256xf32>
    %22 = arith.mulf %21, %20 : vector<8x256xf32>
    %23 = arith.addf %18, %22 : vector<8x256xf32>
    %c5 = arith.constant 5 : index
    %24 = memref.load %arg1[%c5] : memref<9xf32, #tpu.memory_space<smem>>
    %c0_10 = arith.constant 0 : index
    %c0_11 = arith.constant 0 : index
    %25 = vector.load %arg7[%c0_10, %c0_11] : memref<8x256xf32, #tpu.memory_space<vmem>>, vector<8x256xf32>
    %26 = vector.broadcast %24 : f32 to vector<8x256xf32>
    %27 = arith.mulf %26, %25 : vector<8x256xf32>
    %28 = arith.addf %23, %27 : vector<8x256xf32>
    %c6 = arith.constant 6 : index
    %29 = memref.load %arg1[%c6] : memref<9xf32, #tpu.memory_space<smem>>
    %c0_12 = arith.constant 0 : index
    %c0_13 = arith.constant 0 : index
    %30 = vector.load %arg8[%c0_12, %c0_13] : memref<8x256xf32, #tpu.memory_space<vmem>>, vector<8x256xf32>
    %31 = vector.broadcast %29 : f32 to vector<8x256xf32>
    %32 = arith.mulf %31, %30 : vector<8x256xf32>
    %33 = arith.addf %28, %32 : vector<8x256xf32>
    %c7 = arith.constant 7 : index
    %34 = memref.load %arg1[%c7] : memref<9xf32, #tpu.memory_space<smem>>
    %c0_14 = arith.constant 0 : index
    %c0_15 = arith.constant 0 : index
    %35 = vector.load %arg9[%c0_14, %c0_15] : memref<8x256xf32, #tpu.memory_space<vmem>>, vector<8x256xf32>
    %36 = vector.broadcast %34 : f32 to vector<8x256xf32>
    %37 = arith.mulf %36, %35 : vector<8x256xf32>
    %38 = arith.addf %33, %37 : vector<8x256xf32>
    %c8 = arith.constant 8 : index
    %39 = memref.load %arg1[%c8] : memref<9xf32, #tpu.memory_space<smem>>
    %c0_16 = arith.constant 0 : index
    %c0_17 = arith.constant 0 : index
    %40 = vector.load %arg10[%c0_16, %c0_17] : memref<8x256xf32, #tpu.memory_space<vmem>>, vector<8x256xf32>
    %41 = vector.broadcast %39 : f32 to vector<8x256xf32>
    %42 = arith.mulf %41, %40 : vector<8x256xf32>
    %43 = arith.addf %38, %42 : vector<8x256xf32>
    %c0_18 = arith.constant 0 : index
    %c0_19 = arith.constant 0 : index
    %44 = vector.load %arg11[%c0_18, %c0_19] : memref<8x256xf32, #tpu.memory_space<vmem>>, vector<8x256xf32>
    tpu.vector_store %arg11[%c0_18, %c0_19], %43 {strides = array<i32>} : memref<8x256xf32, #tpu.memory_space<vmem>>, vector<8x256xf32>,
    return
  }
  func.func @transform_0(%arg0: i32) -> i32 {
    %c0_i32 = arith.constant 0 : i32
    %c0_i32_0 = arith.constant 0 : i32
    return %c0_i32 : i32
  }
  func.func @transform_1(%arg0: i32) -> (i32, i32) {
    %c0_i32 = arith.constant 0 : i32
    %c0_i32_0 = arith.constant 0 : i32
    return %arg0, %c0_i32 : i32, i32
  }
  func.func @transform_2(%arg0: i32) -> (i32, i32) {
    %c0_i32 = arith.constant 0 : i32
    %c0_i32_0 = arith.constant 0 : i32
    return %arg0, %c0_i32 : i32, i32
  }
  func.func @transform_3(%arg0: i32) -> (i32, i32) {
    %c0_i32 = arith.constant 0 : i32
    %c0_i32_0 = arith.constant 0 : i32
    return %arg0, %c0_i32 : i32, i32
  }
  func.func @transform_4(%arg0: i32) -> (i32, i32) {
    %c0_i32 = arith.constant 0 : i32
    %c0_i32_0 = arith.constant 0 : i32
    return %arg0, %c0_i32 : i32, i32
  }
  func.func @transform_5(%arg0: i32) -> (i32, i32) {
    %c0_i32 = arith.constant 0 : i32
    %c0_i32_0 = arith.constant 0 : i32
    return %arg0, %c0_i32 : i32, i32
  }
  func.func @transform_6(%arg0: i32) -> (i32, i32) {
    %c0_i32 = arith.constant 0 : i32
    %c0_i32_0 = arith.constant 0 : i32
    return %arg0, %c0_i32 : i32, i32
  }
  func.func @transform_7(%arg0: i32) -> (i32, i32) {
    %c0_i32 = arith.constant 0 : i32
    %c0_i32_0 = arith.constant 0 : i32
    return %arg0, %c0_i32 : i32, i32
  }
  func.func @transform_8(%arg0: i32) -> (i32, i32) {
    %c0_i32 = arith.constant 0 : i32
    %c0_i32_0 = arith.constant 0 : i32
    return %arg0, %c0_i32 : i32, i32
  }
  func.func @transform_9(%arg0: i32) -> (i32, i32) {
    %c0_i32 = arith.constant 0 : i32
    %c0_i32_0 = arith.constant 0 : i32
    return %arg0, %c0_i32 : i32, i32
  }
  func.func @transform_10(%arg0: i32) -> (i32, i32) {
    %c0_i32 = arith.constant 0 : i32
    %c0_i32_0 = arith.constant 0 : i32
    return %arg0, %c0_i32 : i32, i32
  }
}

</mosaic_0001>

<bundles_post_ra>
// kernel: tpu_custom_call.1
= control target key start
LH: loop header
LB: loop body
LE: loop exit
PB: predicated region body
PF: predicated region fallthrough
CT: control target
= control target key end

     0   :  { %s2051_s0 = inlined_call_operand.hbm [shape: f32[9], index: 0, kind: input, shape index: {}]   ;;  %s2052_s1 = inlined_call_operand.hbm [shape: f32[16,256], index: 1, kind: input, shape index: {}]   ;;  %s2053_s2 = inlined_call_operand.hbm [shape: f32[16,256], index: 2, kind: input, shape index: {}]   ;;  %s2054_s3 = inlined_call_operand.hbm [shape: f32[16,256], index: 3, kind: input, shape index: {}]   ;;  %s2055_s4 = inlined_call_operand.hbm [shape: f32[16,256], index: 4, kind: input, shape index: {}]   ;;  %s2056_s5 = inlined_call_operand.hbm [shape: f32[16,256], index: 5, kind: input, shape index: {}]   ;;  %s2057_s6 = inlined_call_operand.hbm [shape: f32[16,256], index: 6, kind: input, shape index: {}]   ;;  %s2058_s7 = inlined_call_operand.hbm [shape: f32[16,256], index: 7, kind: input, shape index: {}]   ;;  %s2059_s8 = inlined_call_operand.hbm [shape: f32[16,256], index: 8, kind: input, shape index: {}]   ;;  %s2060_s9 = inlined_call_operand.vmem [shape: f32[16,256], index: 9, kind: input, shape index: {}]   ;;  %s2061_s10 = inlined_call_operand.hbm [shape: f32[16,256], index: 10, kind: output, shape index: {}]  }
   0x1   :  { %2077 = sst [smem:[#allocation32_spill]] %s2053_s2 }
   0x2   :  { %2078 = sst [smem:[#allocation33_spill]] %s2055_s4 }
   0x3   :  { %2079 = sst [smem:[#allocation34_spill]] %s2057_s6 }
   0x4   :  { %15 = vsyncpa [#allocation5], 0 }
   0x5   :  { %16 = vsyncpa [#allocation3], 0 }
   0x6   :  { %18 = vsyncpa [#allocation3 + $0x1], 0 }
   0x7   :  { %19 = vsyncpa [#allocation8], 0 }
   0x8   :  { %21 = vsyncpa [#allocation8 + $0x1], 0 }
   0x9   :  { %22 = vsyncpa [#allocation11], 0 }
   0xa   :  { %24 = vsyncpa [#allocation11 + $0x1], 0 }
   0xb   :  { %25 = vsyncpa [#allocation14], 0 }
   0xc   :  { %27 = vsyncpa [#allocation14 + $0x1], 0 }
   0xd   :  { %28 = vsyncpa [#allocation17], 0 }
   0xe   :  { %30 = vsyncpa [#allocation17 + $0x1], 0 }
   0xf   :  { %31 = vsyncpa [#allocation4], 0 }
  0x10   :  { %33 = vsyncpa [#allocation4 + $0x1], 0  ;;  %s1560_s13 = smov 0   ;;  %s1562_s14 = smov 0  }
  0x11   :  { %s1564_s15 = smov 0   ;;  %s1566_s16 = smov 0  }
  0x12 LB: > { %2080 = sst [smem:[#allocation26_spill]] %s1481_s13  ;;  %s1581_s17 = sadd.s32 1, %s1493_s16   ;;  %s1493_s16 = sphi %s1566_s16, %s2122_s16   ;;  %s1489_s15 = sphi %s1564_s15, %s2124_s15   ;;  %s1485_s14 = sphi %s1562_s14, %s2126_s14   ;;  %s1481_s13 = sphi %s1560_s13, %s2125_s13  }
  0x13   : > { %2081 = sst [smem:[#allocation27_spill]] %s1489_s15  ;;  %s67_s18 = sadd.s32 1, %s1489_s15 }
  0x14   : > { %2082 = sst [smem:[#allocation28_spill]] %s1493_s16  ;;  %s64_s19 = ssub.s32 %s1493_s16, %s1581_s17 }
  0x15   : > { %2083 = sst [smem:[#allocation29_spill]] %s1581_s17  ;;  %p2062_p0 = scmp.ne.s32.totalorder %s1489_s15, %s1485_s14 }
  0x16   : > { %p65_p1 = scmp.eq.s32.totalorder %s64_s19, 0  ;;  %p75_p2 = scmp.eq.s32.totalorder %s1493_s16, 0 }
  0x17   : > { %p1118_p4 = scmp.lt.s32.totalorder %s1493_s16, 2  ;;  %s1598_s21 = sand.u32 1, %s1489_s15  }
  0x18   : > { %s1592_s20 = scalar_select %p65_p1, %s1489_s15, %s67_s18  }
  0x19   : > { %p76_p5 = por %p75_p2, %p2062_p0  ;;  %s1601_s22 = sshll.u32 %s1598_s21, 4 }
  0x1a   : > { %2084 = sst [smem:[#allocation30_spill]] %s1592_s20  ;;  %s1604_s23 = sshll.u32 %s1493_s16, 8 }
  0x1b   : > { %p1606_p6 = pnand %p1118_p4, %p76_p5  ;;  %s1611_s25 = sand.u32 1, %s1493_s16  }
  0x1c   : > { %s2086_s2 = sld [smem:[#allocation32_spill]]  ;;  %s370_s29 = scalar_lea.vmem [#allocation7], %s1601_s22 }
  0x1d   : > { %s2085_s24 = scalar_select %p1606_p6, 1, 0 }
  0x1e   : > { %s378_s30 = sshll.u32 %s370_s29, 4  ;;  %p1627_p8 = pneg %p1606_p6  ;;  %s1620_s30 = int_to_ptr.vmem [resolvable:$true] %s378_s30 }
  0x22   : > { %s1617_s28 = scalar_lea.hbm %s2086_s2, %s1604_s23  ;;  %s1159_s27 = scalar_lea.hbm %s2086_s2, 512 }
  0x23   : > { %s1154_s12 = scalar_lea.hbm %s1617_s28, 256  ;;  %p1160_p11 = scmp.lt.u32.totalorder %s1617_s28, %s2086_s2 }
  0x24   : > { %p1155_p7 = scmp.ne.s32.totalorder %s1617_s28, %s1154_s12  ;;  %p1161_p12 = scmp.lt.u32.totalorder %s1159_s27, %s1154_s12 }
  0x25   : > { %p1163_p1 = scmp.lt.u32.totalorder %s1154_s12, %s1617_s28 }
  0x26   : > { %p1157_p9 = pnand %p1627_p8, %p1155_p7  ;;  %p1162_p13 = por %p1161_p12, %p1160_p11 }
  0x28   : > { %p1158_p10 = pneg %p1157_p9  ;;  %p1164_p2 = por %p1163_p1, %p1162_p13 }
  0x2a   : > { %p1165_p4 = pnand %p1164_p2, %p1158_p10 }
  0x2c   : > { %1168 = shalt.err (!%p1165_p4)
}
  0x2d   : > { %s1169_s11 = scalar_lea.vmem %s1620_s30, 256  ;;  %s1495_s19 = smov [#allocation7]  }
  0x2e   : > { %p1170_p5 = scmp.ne.s32.totalorder %s1620_s30, %s1169_s11  ;;  %s1174_s26 = sshll.u32 %s1495_s19, 4  ;;  %s1175_s26 = int_to_ptr.vmem [resolvable:$false] %s1174_s26 }
  0x2f   : > { %s1176_s20 = scalar_lea.vmem %s1175_s26, 512  ;;  %p1177_p3 = scmp.lt.s32.totalorder %s1620_s30, %s1175_s26 }
  0x30   : > { %p1172_p7 = pnand %p1170_p5, %p1627_p8  ;;  %p1178_p0 = scmp.lt.s32.totalorder %s1176_s20, %s1169_s11 }
  0x32   : > { %p1173_p9 = pneg %p1172_p7  ;;  %p1179_p11 = por %p1178_p0, %p1177_p3 }
  0x34   : > { %p1180_p12 = pnand %p1179_p11, %p1173_p9 }
  0x36   : > { %1183 = shalt.err (!%p1180_p12)
}
  0x37   : > { %s2088_s12 = scalar_lea.sflag [#allocation8], %s1611_s25  ;;  %s2089_s4 = sld [smem:[#allocation33_spill]] }
  0x38   : > { %1094 = dma.hbm_to_vmem [thread:$0]  (!%p1606_p6), %s1617_s28, 256, %s1620_s30, %s2088_s12  }
  0x39   : > { %s408_s11 = scalar_lea.vmem [#allocation10], %s1601_s22 }
  0x3a   : > { %s416_s26 = sshll.u32 %s408_s11, 4  ;;  %s417_s26 = int_to_ptr.vmem [resolvable:$true] %s416_s26 }
  0x3d   : > { %s1656_s19 = scalar_lea.hbm %s2089_s4, %s1604_s23  ;;  %s1189_s30 = scalar_lea.hbm %s2089_s4, 512 }
  0x3e   : > { %s1184_s2 = scalar_lea.hbm %s1656_s19, 256  ;;  %p1190_p13 = scmp.lt.u32.totalorder %s1656_s19, %s2089_s4 }
  0x3f   : > { %p1185_p0 = scmp.ne.s32.totalorder %s1656_s19, %s1184_s2  ;;  %p1191_p1 = scmp.lt.u32.totalorder %s1189_s30, %s1184_s2 }
  0x40   : > { %p1193_p4 = scmp.lt.u32.totalorder %s1184_s2, %s1656_s19 }
  0x41   : > { %p1187_p3 = pnand %p1185_p0, %p1627_p8  ;;  %p1192_p2 = por %p1191_p1, %p1190_p13 }
  0x43   : > { %p1188_p10 = pneg %p1187_p3  ;;  %p1194_p5 = por %p1193_p4, %p1192_p2 }
  0x45   : > { %p1195_p7 = pnand %p1194_p5, %p1188_p10 }
  0x47   : > { %1198 = shalt.err (!%p1195_p7)
}
  0x48   : > { %s1199_s29 = scalar_lea.vmem %s417_s26, 256  ;;  %s1496_s11 = smov [#allocation10]  }
  0x49   : > { %p1200_p9 = scmp.ne.s32.totalorder %s417_s26, %s1199_s29  ;;  %s1204_s20 = sshll.u32 %s1496_s11, 4  ;;  %s1205_s20 = int_to_ptr.vmem [resolvable:$false] %s1204_s20 }
  0x4a   : > { %s1206_s17 = scalar_lea.vmem %s1205_s20, 512  ;;  %p1207_p0 = scmp.lt.s32.totalorder %s417_s26, %s1205_s20 }
  0x4b   : > { %p1202_p11 = pnand %p1200_p9, %p1627_p8  ;;  %p1208_p3 = scmp.lt.s32.totalorder %s1206_s17, %s1199_s29 }
  0x4d   : > { %p1203_p12 = pneg %p1202_p11  ;;  %p1209_p6 = por %p1208_p3, %p1207_p0 }
  0x4f   : > { %p1210_p1 = pnand %p1209_p6, %p1203_p12 }
  0x51   : > { %1213 = shalt.err (!%p1210_p1)
}
  0x52   : > { %p2090_p13 = scmp.ne.s32.totalorder %s2085_s24, 0  ;;  %s2091_s2 = scalar_lea.sflag [#allocation11], %s1611_s25 }
  0x53   : > { %s2092_s6 = sld [smem:[#allocation34_spill]]  ;;  %s446_s20 = scalar_lea.vmem [#allocation13], %s1601_s22 }
  0x54   : > { %1100 = dma.hbm_to_vmem [thread:$0]  (!%p2090_p13), %s1656_s19, 256, %s417_s26, %s2091_s2  }
  0x55   : > { %s454_s27 = sshll.u32 %s446_s20, 4  ;;  %s455_s27 = int_to_ptr.vmem [resolvable:$true] %s454_s27 }
  0x59   : > { %s1683_s12 = scalar_lea.hbm %s2092_s6, %s1604_s23  ;;  %s1219_s26 = scalar_lea.hbm %s2092_s6, 512 }
  0x5a   : > { %s1214_s11 = scalar_lea.hbm %s1683_s12, 256  ;;  %p1220_p4 = scmp.lt.u32.totalorder %s1683_s12, %s2092_s6 }
  0x5b   : > { %p1215_p6 = scmp.ne.s32.totalorder %s1683_s12, %s1214_s11  ;;  %p1221_p5 = scmp.lt.u32.totalorder %s1219_s26, %s1214_s11 }
  0x5c   : > { %p1223_p9 = scmp.lt.u32.totalorder %s1214_s11, %s1683_s12 }
  0x5d   : > { %p1217_p10 = pnand %p1215_p6, %p1627_p8  ;;  %p1222_p7 = por %p1221_p5, %p1220_p4 }
  0x5f   : > { %p1218_p2 = pneg %p1217_p10  ;;  %p1224_p11 = por %p1223_p9, %p1222_p7 }
  0x61   : > { %p1225_p12 = pnand %p1224_p11, %p1218_p2 }
  0x63   : > { %1228 = shalt.err (!%p1225_p12)
}
  0x64   : > { %s1229_s30 = scalar_lea.vmem %s455_s27, 256  ;;  %s1497_s20 = smov [#allocation13]  }
  0x65   : > { %p1230_p0 = scmp.ne.s32.totalorder %s455_s27, %s1229_s30  ;;  %s1234_s29 = sshll.u32 %s1497_s20, 4  ;;  %s1235_s29 = int_to_ptr.vmem [resolvable:$false] %s1234_s29 }
  0x66   : > { %s1236_s17 = scalar_lea.vmem %s1235_s29, 512  ;;  %p1237_p6 = scmp.lt.s32.totalorder %s455_s27, %s1235_s29 }
  0x67   : > { %p1232_p3 = pnand %p1230_p0, %p1627_p8  ;;  %p1238_p10 = scmp.lt.s32.totalorder %s1236_s17, %s1229_s30 }
  0x69   : > { %p1233_p1 = pneg %p1232_p3  ;;  %p1239_p13 = por %p1238_p10, %p1237_p6 }
  0x6b   : > { %p1240_p4 = pnand %p1239_p13, %p1233_p1 }
  0x6d   : > { %1243 = shalt.err (!%p1240_p4)
}
  0x6e   : > { %p2093_p5 = scmp.ne.s32.totalorder %s2085_s24, 0  ;;  %s2094_s11 = scalar_lea.sflag [#allocation14], %s1611_s25 }
  0x6f   : > { %s1707_s29 = sadd.s32 4294967295, %s1493_s16   ;;  %s998_s19 = sadd.s32 4294967294, %s1493_s16  }
  0x70   : > { %1106 = dma.hbm_to_vmem [thread:$0]  (!%p2093_p5), %s1683_s12, 256, %s455_s27, %s2094_s11  }
  0x71   : > { %p80_p13 = scmp.ne.s32.totalorder %s1485_s14, %s1481_s13  ;;  %p2069_p2 = scmp.eq.s32.totalorder %s1707_s29, 0 }
  0x72   : > { %p312_p7 = scmp.eq.s32.totalorder %s1707_s29, 1  ;;  %p318_p9 = scmp.eq.s32.totalorder %s998_s19, 1 }
  0x73   : > { %p1716_p11 = por %p2069_p2, %p80_p13  ;;  %p999_p12 = scmp.ge.s32.totalorder %s1493_s16, 1 }
  0x74   : > { %p2096_p0 = scmp.ne.s32.totalorder %s1489_s15, %s1485_s14  ;;  %p1728_p1 = por %p318_p9, %p80_p13 }
  0x75   : > { %s2095_s26 = scalar_select %p1716_p11, 1, 0 }
  0x76   : > { %p1724_p3 = por %p312_p7, %p2096_p0  ;;  %p325_p6 = scmp.lt.s32.totalorder %s1493_s16, 3 }
  0x77   : > { %s2098_s27 = scalar_select %p1728_p1, 1, 0 }
  0x78   : > { %s2097_s12 = scalar_select %p1724_p3, 1, 0 }
  0x79   : > { %2099 = sst [smem:[#allocation31_spill]] %s2098_s27  ;;  %p1733_p10 = pnand %p999_p12, %p325_p6 }
  0x7a   : > { %s1741_s20 = scalar_lea.hbm %s2052_s1, %s1604_s23  ;;  %s351_s17 = scalar_lea.vmem [#allocation6], %s1601_s22 }
  0x7b   : > { %s2100_s2 = scalar_select %p1733_p10, 1, 0 }
  0x7c   : > { %s359_s11 = sshll.u32 %s351_s17, 4  ;;  %s348_s19 = scalar_lea.sflag [#allocation3], %s1598_s21  ;;  %s360_s11 = int_to_ptr.vmem [resolvable:$true] %s359_s11 }
  0x7d   : > { %s1244_s4 = scalar_lea.hbm %s1741_s20, 256  ;;  %s1249_s30 = scalar_lea.hbm %s2052_s1, 512 }
  0x7e   : > { %p1245_p13 = scmp.ne.s32.totalorder %s1741_s20, %s1244_s4  ;;  %p1250_p12 = scmp.lt.u32.totalorder %s1741_s20, %s2052_s1 }
  0x7f   : > { %p1251_p0 = scmp.lt.u32.totalorder %s1249_s30, %s1244_s4  ;;  %p1253_p2 = scmp.lt.u32.totalorder %s1244_s4, %s1741_s20 }
  0x80   : > { %p1247_p7 = pnand %p1245_p13, %p1627_p8 }
  0x81   : > { %p1252_p6 = por %p1251_p0, %p1250_p12 }
  0x82   : > { %p1248_p9 = pneg %p1247_p7 }
  0x83   : > { %p1254_p1 = por %p1253_p2, %p1252_p6 }
  0x85   : > { %p1255_p4 = pnand %p1254_p1, %p1248_p9 }
  0x87   : > { %1258 = shalt.err (!%p1255_p4)
}
  0x88   : > { %s1259_s17 = scalar_lea.vmem %s360_s11, 256  ;;  %s1498_s27 = smov [#allocation6]  }
  0x89   : > { %p1260_p3 = scmp.ne.s32.totalorder %s360_s11, %s1259_s17  ;;  %s1264_s13 = sshll.u32 %s1498_s27, 4  ;;  %s1265_s13 = int_to_ptr.vmem [resolvable:$false] %s1264_s13 }
  0x8a   : > { %s1266_s6 = scalar_lea.vmem %s1265_s13, 512  ;;  %p1267_p11 = scmp.lt.s32.totalorder %s360_s11, %s1265_s13 }
  0x8b   : > { %p1262_p13 = pnand %p1260_p3, %p1627_p8  ;;  %p1268_p10 = scmp.lt.s32.totalorder %s1266_s6, %s1259_s17 }
  0x8d   : > { %p1263_p7 = pneg %p1262_p13  ;;  %p1269_p5 = por %p1268_p10, %p1267_p11 }
  0x8f   : > { %p1270_p0 = pnand %p1269_p5, %p1263_p7 }
  0x91   : > { %1273 = shalt.err (!%p1270_p0)
}
  0x92   : > { %p2101_p12 = scmp.ne.s32.totalorder %s2085_s24, 0  ;;  %p2102_p2 = scmp.eq.s32.totalorder %s1707_s29, 0 }
  0x93   : > { %p2103_p3 = scmp.ne.s32.totalorder %s2100_s2, 0  ;;  %s1777_s16 = scalar_lea.hbm %s2054_s3, %s1604_s23 }
  0x94   : > { %1091 = dma.hbm_to_vmem [thread:$0]  (!%p2101_p12), %s1741_s20, 256, %s360_s11, %s348_s19  }
  0x95   : > { %p2104_p1 = pneg %p2103_p3  ;;  %s389_s27 = scalar_lea.vmem [#allocation9], %s1601_s22 }
  0x96   : > { %s397_s28 = sshll.u32 %s389_s27, 4  ;;  %s1274_s20 = scalar_lea.hbm %s2051_s0, 16  ;;  %s1780_s28 = int_to_ptr.vmem [resolvable:$true] %s397_s28 }
  0x97   : > { %p1769_p4 = pnand %p2104_p1, %p2102_p2  ;;  %p1275_p5 = scmp.ne.s32.totalorder %s2051_s0, %s1274_s20 }
  0x98   : > { %p1281_p6 = scmp.lt.u32.totalorder %s1274_s20, %s2051_s0 }
  0x99   : > { %p1276_p11 = pneg %p1769_p4 }
  0x9b   : > { %p1277_p10 = pnand %p1276_p11, %p1275_p5 }
  0x9d   : > { %p1278_p9 = pneg %p1277_p10 }
  0x9f   : > { %p1283_p13 = pnand %p1281_p6, %p1278_p9 }
  0xa1   : > { %1286 = shalt.err (!%p1283_p13)
}
  0xa2   : > { %s1499_s15 = smov [#allocation2]   ;;  %s1287_s17 = scalar_lea.hbm %s1777_s16, 256 }
  0xa3   : > { %1087 = dma.hbm_to_smem (!%p1769_p4), %s2051_s0, 16, %s1499_s15, [#allocation5]  }
  0xa4   : > { %p1288_p7 = scmp.ne.s32.totalorder %s1777_s16, %s1287_s17  ;;  %s1292_s19 = scalar_lea.hbm %s2054_s3, 512 }
  0xa5   : > { %p1293_p1 = scmp.lt.u32.totalorder %s1777_s16, %s2054_s3  ;;  %p1294_p5 = scmp.lt.u32.totalorder %s1292_s19, %s1287_s17 }
  0xa6   : > { %p1290_p0 = pnand %p1288_p7, %p1627_p8  ;;  %p1296_p10 = scmp.lt.u32.totalorder %s1287_s17, %s1777_s16 }
  0xa7   : > { %p1295_p11 = por %p1294_p5, %p1293_p1 }
  0xa8   : > { %p1291_p2 = pneg %p1290_p0 }
  0xa9   : > { %p1297_p9 = por %p1296_p10, %p1295_p11 }
  0xab   : > { %p1298_p6 = pnand %p1297_p9, %p1291_p2 }
  0xad   : > { %1301 = shalt.err (!%p1298_p6)
}
  0xae   : > { %s1302_s13 = scalar_lea.vmem %s1780_s28, 256  ;;  %s1500_s15 = smov [#allocation9]  }
  0xaf   : > { %p1303_p4 = scmp.ne.s32.totalorder %s1780_s28, %s1302_s13  ;;  %s1307_s27 = sshll.u32 %s1500_s15, 4  ;;  %s1308_s27 = int_to_ptr.vmem [resolvable:$false] %s1307_s27 }
  0xb0   : > { %s1309_s30 = scalar_lea.vmem %s1308_s27, 512  ;;  %p1310_p0 = scmp.lt.s32.totalorder %s1780_s28, %s1308_s27 }
  0xb1   : > { %p1305_p13 = pnand %p1303_p4, %p1627_p8  ;;  %p1311_p3 = scmp.lt.s32.totalorder %s1309_s30, %s1302_s13 }
  0xb3   : > { %p1306_p7 = pneg %p1305_p13  ;;  %p1312_p1 = por %p1311_p3, %p1310_p0 }
  0xb5   : > { %p1313_p5 = pnand %p1312_p1, %p1306_p7 }
  0xb7   : > { %1316 = shalt.err (!%p1313_p5)
}
  0xb8   : > { %s2106_s17 = scalar_lea.sflag [#allocation8], %s1611_s25  ;;  %s1825_s19 = scalar_lea.hbm %s2056_s5, %s1604_s23 }
  0xb9   : > { %1097 = dma.hbm_to_vmem [thread:$0]  (!%p2101_p12), %s1777_s16, 256, %s1780_s28, %s2106_s17  }
  0xba   : > { %s427_s6 = scalar_lea.vmem [#allocation12], %s1601_s22  ;;  %s1832_s27 = scalar_lea.hbm %s2058_s7, %s1604_s23 }
  0xbb   : > { %s435_s4 = sshll.u32 %s427_s6, 4  ;;  %s1317_s30 = scalar_lea.hbm %s1825_s19, 256  ;;  %s436_s4 = int_to_ptr.vmem [resolvable:$true] %s435_s4 }
  0xbc   : > { %p1318_p3 = scmp.ne.s32.totalorder %s1825_s19, %s1317_s30  ;;  %s1322_s17 = scalar_lea.hbm %s2056_s5, 512 }
  0xbd   : > { %p1323_p10 = scmp.lt.u32.totalorder %s1825_s19, %s2056_s5  ;;  %p1324_p9 = scmp.lt.u32.totalorder %s1322_s17, %s1317_s30 }
  0xbe   : > { %p1320_p2 = pnand %p1318_p3, %p1627_p8  ;;  %p1326_p4 = scmp.lt.u32.totalorder %s1317_s30, %s1825_s19 }
  0xbf   : > { %p1325_p6 = por %p1324_p9, %p1323_p10 }
  0xc0   : > { %p1321_p11 = pneg %p1320_p2 }
  0xc1   : > { %p1327_p13 = por %p1326_p4, %p1325_p6 }
  0xc3   : > { %p1328_p7 = pnand %p1327_p13, %p1321_p11 }
  0xc5   : > { %1331 = shalt.err (!%p1328_p7)
}
  0xc6   : > { %s1332_s6 = scalar_lea.vmem %s436_s4, 256  ;;  %s1501_s13 = smov [#allocation12]  }
  0xc7   : > { %p1333_p0 = scmp.ne.s32.totalorder %s436_s4, %s1332_s6  ;;  %s1337_s15 = sshll.u32 %s1501_s13, 4  ;;  %s1338_s15 = int_to_ptr.vmem [resolvable:$false] %s1337_s15 }
  0xc8   : > { %s1339_s16 = scalar_lea.vmem %s1338_s15, 512  ;;  %p1340_p3 = scmp.lt.s32.totalorder %s436_s4, %s1338_s15 }
  0xc9   : > { %p1335_p1 = pnand %p1333_p0, %p1627_p8  ;;  %p1341_p2 = scmp.lt.s32.totalorder %s1339_s16, %s1332_s6 }
  0xcb   : > { %p1336_p5 = pneg %p1335_p1  ;;  %p1342_p12 = por %p1341_p2, %p1340_p3 }
  0xcd   : > { %p1343_p9 = pnand %p1342_p12, %p1336_p5 }
  0xcf   : > { %1346 = shalt.err (!%p1343_p9)
}
  0xd0   : > { %p2107_p10 = scmp.ne.s32.totalorder %s2085_s24, 0  ;;  %s2108_s30 = scalar_lea.sflag [#allocation11], %s1611_s25 }
  0xd1   : > { %s465_s28 = scalar_lea.vmem [#allocation15], %s1601_s22  ;;  %s1347_s20 = scalar_lea.hbm %s1832_s27, 256 }
  0xd2   : > { %1103 = dma.hbm_to_vmem [thread:$0]  (!%p2107_p10), %s1825_s19, 256, %s436_s4, %s2108_s30  }
  0xd3   : > { %s473_s17 = sshll.u32 %s465_s28, 4  ;;  %p1348_p11 = scmp.ne.s32.totalorder %s1832_s27, %s1347_s20  ;;  %s474_s17 = int_to_ptr.vmem [resolvable:$true] %s473_s17 }
  0xd4   : > { %s1352_s13 = scalar_lea.hbm %s2058_s7, 512  ;;  %p1353_p4 = scmp.lt.u32.totalorder %s1832_s27, %s2058_s7 }
  0xd5   : > { %p1350_p12 = pnand %p1348_p11, %p1627_p8  ;;  %p1354_p13 = scmp.lt.u32.totalorder %s1352_s13, %s1347_s20 }
  0xd6   : > { %p1356_p0 = scmp.lt.u32.totalorder %s1347_s20, %s1832_s27 }
  0xd7   : > { %p1351_p6 = pneg %p1350_p12  ;;  %p1355_p7 = por %p1354_p13, %p1353_p4 }
  0xd9   : > { %p1357_p1 = por %p1356_p0, %p1355_p7 }
  0xdb   : > { %p1358_p5 = pnand %p1357_p1, %p1351_p6 }
  0xdd   : > { %1361 = shalt.err (!%p1358_p5)
}
  0xde   : > { %s1362_s19 = scalar_lea.vmem %s474_s17, 256  ;;  %s1502_s4 = smov [#allocation15]  }
  0xdf   : > { %p1363_p3 = scmp.ne.s32.totalorder %s474_s17, %s1362_s19  ;;  %s1367_s30 = sshll.u32 %s1502_s4, 4  ;;  %s1368_s30 = int_to_ptr.vmem [resolvable:$false] %s1367_s30 }
  0xe0   : > { %s1369_s28 = scalar_lea.vmem %s1368_s30, 512  ;;  %p1370_p11 = scmp.lt.s32.totalorder %s474_s17, %s1368_s30 }
  0xe1   : > { %p1365_p2 = pnand %p1363_p3, %p1627_p8  ;;  %p1371_p12 = scmp.lt.s32.totalorder %s1369_s28, %s1362_s19 }
  0xe3   : > { %p1366_p9 = pneg %p1365_p2  ;;  %p1372_p10 = por %p1371_p12, %p1370_p11 }
  0xe5   : > { %p1373_p4 = pnand %p1372_p10, %p1366_p9 }
  0xe7   : > { %1376 = shalt.err (!%p1373_p4)
}
  0xe8   : > { %p2109_p13 = scmp.ne.s32.totalorder %s2085_s24, 0  ;;  %s2110_s20 = scalar_lea.sflag [#allocation14], %s1611_s25 }
  0xe9   : > { %s1877_s13 = scalar_lea.hbm %s2059_s8, %s1604_s23  ;;  %s484_s15 = scalar_lea.vmem [#allocation16], %s1601_s22 }
  0xea   : > { %1109 = dma.hbm_to_vmem [thread:$0]  (!%p2109_p13), %s1832_s27, 256, %s474_s17, %s2110_s20  }
  0xeb   : > { %s492_s16 = sshll.u32 %s484_s15, 4  ;;  %s481_s19 = scalar_lea.sflag [#allocation17], %s1598_s21  ;;  %s493_s16 = int_to_ptr.vmem [resolvable:$true] %s492_s16 }
  0xec   : > { %s1377_s25 = scalar_lea.hbm %s1877_s13, 256  ;;  %s1382_s17 = scalar_lea.hbm %s2059_s8, 512 }
  0xed   : > { %p1378_p10 = scmp.ne.s32.totalorder %s1877_s13, %s1377_s25  ;;  %p1383_p0 = scmp.lt.u32.totalorder %s1877_s13, %s2059_s8 }
  0xee   : > { %p1384_p1 = scmp.lt.u32.totalorder %s1382_s17, %s1377_s25  ;;  %p1386_p3 = scmp.lt.u32.totalorder %s1377_s25, %s1877_s13 }
  0xef   : > { %p1380_p6 = pnand %p1378_p10, %p1627_p8 }
  0xf0   : > { %p1385_p5 = por %p1384_p1, %p1383_p0 }
  0xf1   : > { %p1381_p7 = pneg %p1380_p6 }
  0xf2   : > { %p1387_p2 = por %p1386_p3, %p1385_p5 }
  0xf4   : > { %p1388_p9 = pnand %p1387_p2, %p1381_p7 }
  0xf6   : > { %1391 = shalt.err (!%p1388_p9)
}
  0xf7   : > { %s1392_s21 = scalar_lea.vmem %s493_s16, 256  ;;  %s1503_s22 = smov [#allocation16]  }
  0xf8   : > { %p1393_p11 = scmp.ne.s32.totalorder %s493_s16, %s1392_s21  ;;  %s1397_s28 = sshll.u32 %s1503_s22, 4  ;;  %s1398_s28 = int_to_ptr.vmem [resolvable:$false] %s1397_s28 }
  0xf9   : > { %s1399_s20 = scalar_lea.vmem %s1398_s28, 512  ;;  %p1400_p10 = scmp.lt.s32.totalorder %s493_s16, %s1398_s28 }
  0xfa   : > { %p1395_p12 = pnand %p1393_p11, %p1627_p8  ;;  %p1401_p6 = scmp.lt.s32.totalorder %s1399_s20, %s1392_s21 }
  0xfc   : > { %p1396_p4 = pneg %p1395_p12  ;;  %p1402_p13 = por %p1401_p6, %p1400_p10 }
  0xfe   : > { %p1403_p0 = pnand %p1402_p13, %p1396_p4 }
 0x100   : > { %1406 = shalt.err (!%p1403_p0)
}
 0x101   : > { %p2111_p1 = scmp.ne.s32.totalorder %s2085_s24, 0  ;;  %p2112_p7 = scmp.ne.s32.totalorder %s2100_s2, 0 }
 0x102   : > { %p2113_p5 = scmp.eq.s32.totalorder (!%p2112_p7), %s1707_s29, 0 }
 0x103   : > { %1112 = dma.hbm_to_vmem [thread:$0]  (!%p2111_p1), %s1877_s13, 256, %s493_s16, %s481_s19  }
 0x104   : > { %509 = sbr.rel (%p2112_p7) target bundleno = 326 (0x146), region = 60 }
 0x10b   : > { %1452 = dma.done.wait (%p2113_p5), [#allocation5], 16   ;;  %p2114_p8 = pmov %p2113_p5 }
 0x10c   : > { %s1905_s18 = sand.u32 1, %s1485_s14   ;;  %p2115_p13 = scmp.ne.s32.totalorder %s2095_s26, 0 }
 0x10d   : > { %1454 = vsyncadd (%p2114_p8), [#allocation5], 4294967280  ;;  %s1908_s11 = sshll.u32 %s1905_s18, 4  ;;  %s516_s24 = scalar_lea.sflag [#allocation3], %s1905_s18 }
 0x10e   : > { %s519_s6 = scalar_lea.vmem [#allocation6], %s1908_s11 }
 0x10f   : > { %1456 = dma.done.wait (%p2115_p13), %s516_s24, 256  }
 0x110   : > { %1458 = vsyncadd (%p2115_p13), %s516_s24, 4294967040  ;;  %s524_s2 = sand.u32 1, %s1707_s29   ;;  %s528_s15 = scalar_lea.vmem [#allocation7], %s1908_s11 }
 0x111   : > { %s525_s13 = scalar_lea.sflag [#allocation8], %s524_s2 }
 0x112   : > { %1460 = dma.done.wait (%p2115_p13), %s525_s13, 512  }
 0x113   : > { %1462 = vsyncadd (%p2115_p13), %s525_s13, 4294966784  ;;  %s537_s16 = scalar_lea.vmem [#allocation9], %s1908_s11  ;;  %s543_s19 = scalar_lea.sflag [#allocation11], %s524_s2 }
 0x114   : > { %s546_s25 = scalar_lea.vmem [#allocation10], %s1908_s11 }
 0x115   : > { %1464 = dma.done.wait (%p2115_p13), %s543_s19, 512  }
 0x116   : > { %1466 = vsyncadd (%p2115_p13), %s543_s19, 4294966784  ;;  %s555_s4 = scalar_lea.vmem [#allocation12], %s1908_s11  ;;  %s561_s27 = scalar_lea.sflag [#allocation14], %s524_s2 }
 0x117   : > { %s564_s17 = scalar_lea.vmem [#allocation13], %s1908_s11 }
 0x118   : > { %1468 = dma.done.wait (%p2115_p13), %s561_s27, 512  }
 0x119   : > { %1470 = vsyncadd (%p2115_p13), %s561_s27, 4294966784  ;;  %s573_s30 = scalar_lea.vmem [#allocation15], %s1908_s11  ;;  %s579_s23 = scalar_lea.sflag [#allocation17], %s1905_s18 }
 0x11a   : > { %s582_s21 = scalar_lea.vmem [#allocation16], %s1908_s11 }
 0x11b   : > { %1472 = dma.done.wait (%p2115_p13), %s579_s23, 256  }
 0x11c   : > { %1474 = vsyncadd (%p2115_p13), %s579_s23, 4294967040 }
 0x11d   : > { %587 = sfence }
 0x11e   : > { %p660_p3 = scmp.lt.s32.totalorder %s1707_s29, 1  ;;  %s665_s22 = sld [smem:[#allocation2]]  ;;  %v666_v0 = vld [vmem:[%s519_s6] sm:$0xff]  ;;  %v667_v2 = vld [vmem:[%s519_s6 + $0x8] sm:$0xff] }
 0x11f   : > { %s1039_s28 = sld [smem:[#allocation2 + $0x1]]  ;;  %s1945_s24 = sld [smem:[#allocation2 + $0x2]]  ;;  %v672_v1 = vld [vmem:[%s528_s15] sm:$0xff]  ;;  %v673_v3 = vld [vmem:[%s528_s15 + $0x8] sm:$0xff] }
 0x120   : > { %s1943_s20 = scalar_select %p660_p3, %s1707_s29, 1  ;;  %v680_v6 = vld [vmem:[%s537_s16] sm:$0xff]  ;;  %v681_v12 = vld [vmem:[%s537_s16 + $0x8] sm:$0xff] }
 0x121   : > { %s1947_s2 = sld [smem:[#allocation2 + $0x3]]  ;;  %s1951_s26 = sld [smem:[#allocation2 + $0x4]]  ;;  %v688_v7 = vld [vmem:[%s546_s25] sm:$0xff]  ;;  %v689_v24 = vld [vmem:[%s546_s25 + $0x8] sm:$0xff] }
 0x122   : > { %s1955_s13 = sld [smem:[#allocation2 + $0x5]]  ;;  %s1961_s19 = sld [smem:[#allocation2 + $0x6]]  ;;  %v696_v15 = vld [vmem:[%s555_s4] sm:$0xff]  ;;  %v697_v25 = vld [vmem:[%s555_s4 + $0x8] sm:$0xff] }
 0x123   : > { %s1967_s27 = sld [smem:[#allocation2 + $0x7]]  ;;  %s1975_s6 = sld [smem:[#allocation2 + $0x8]]  ;;  %v704_v20 = vld [vmem:[%s564_s17] sm:$0xff]  ;;  %v705_v31 = vld [vmem:[%s564_s17 + $0x8] sm:$0xff] }
 0x124   : > { %v668_v4 = vstv %s665_s22  ;;  %s1060_s15 = sshll.u32 %s1943_s20, 4  ;;  %v712_v28 = vld [vmem:[%s573_s30] sm:$0xff]  ;;  %v713_v38 = vld [vmem:[%s573_s30 + $0x8] sm:$0xff]  ;;  %s659_s25 = scalar_lea.vmem [#allocation18], %s1908_s11 }
 0x125   : > { %v674_v5 = vstv %s1039_s28  ;;  %v669_v8 = vmul.f32 %v668_v4, %v666_v0  ;;  %v670_v10 = vmul.f32 %v668_v4, %v667_v2  ;;  %v682_v13 = vstv %s1945_s24  ;;  %s664_s22 = scalar_lea.vmem %s2060_s9, %s1060_s15  ;;  %v720_v36 = vld [vmem:[%s582_s21] sm:$0xff]  ;;  %v721_v45 = vld [vmem:[%s582_s21 + $0x8] sm:$0xff]  ;;  %s752_s4 = sshll.u32 %s659_s25, 4  ;;  %s2004_s4 = int_to_ptr.vmem [resolvable:$true] %s752_s4 }
 0x126   : > { %v675_v9 = vmul.f32 %v674_v5, %v672_v1  ;;  %v676_v11 = vmul.f32 %v674_v5, %v673_v3  ;;  %v683_v17 = vmul.f32 %v682_v13, %v680_v6  ;;  %v684_v23 = vmul.f32 %v682_v13, %v681_v12  ;;  %v728_v43 = vld [vmem:[%s664_s22] sm:$0xff]  ;;  %v729_v50 = vld [vmem:[%s664_s22 + $0x8] sm:$0xff]  ;;  %s1061_s17 = sshll.u32 %s1707_s29, 8  ;;  %s738_s11 = scalar_lea.sflag [#allocation4], %s1905_s18 }
 0x127   : > { %v690_v14 = vstv %s1947_s2  ;;  %v698_v19 = vstv %s1951_s26  ;;  %s2009_s28 = scalar_lea.hbm %s2061_s10, %s1061_s17  ;;  %s1407_s20 = scalar_lea.vmem %s2004_s4, 256 }
 0x128   : > { %v677_v16 = vadd.f32 %v675_v9, %v669_v8  ;;  %v691_v18 = vmul.f32 %v690_v14, %v688_v7  ;;  %v706_v21 = vstv %s1955_s13  ;;  %v678_v22 = vadd.f32 %v676_v11, %v670_v10  ;;  %p1408_p2 = scmp.ne.s32.totalorder %s2004_s4, %s1407_s20  ;;  %p2116_p9 = scmp.ne.s32.totalorder %s2097_s12, 0 }
 0x129   : > { %v699_v27 = vmul.f32 %v698_v19, %v696_v15  ;;  %v714_v29 = vstv %s1961_s19  ;;  %v707_v33 = vmul.f32 %v706_v21, %v704_v20  ;;  %v692_v34 = vmul.f32 %v690_v14, %v689_v24  ;;  %s1504_s29 = smov [#allocation18]  }
 0x12a   : > { %v685_v26 = vadd.f32 %v683_v17, %v677_v16  ;;  %v686_v30 = vadd.f32 %v684_v23, %v678_v22  ;;  %v700_v35 = vmul.f32 %v698_v19, %v697_v25  ;;  %v722_v37 = vstv %s1967_s27  ;;  %p1409_p11 = pnand %p1408_p2, %p2116_p9  ;;  %s1411_s24 = sshll.u32 %s1504_s29, 4  ;;  %s1412_s24 = int_to_ptr.vmem [resolvable:$false] %s1411_s24 }
 0x12b   : > { %v715_v40 = vmul.f32 %v714_v29, %v712_v28  ;;  %v708_v42 = vmul.f32 %v706_v21, %v705_v31  ;;  %v730_v44 = vstv %s1975_s6  ;;  %v723_v47 = vmul.f32 %v722_v37, %v720_v36  ;;  %s1413_s2 = scalar_lea.vmem %s1412_s24, 512  ;;  %p1414_p4 = scmp.lt.s32.totalorder %s2004_s4, %s1412_s24 }
 0x12c   : > { %v693_v32 = vadd.f32 %v691_v18, %v685_v26  ;;  %v694_v41 = vadd.f32 %v692_v34, %v686_v30  ;;  %v716_v49 = vmul.f32 %v714_v29, %v713_v38  ;;  %v731_v52 = vmul.f32 %v730_v44, %v728_v43  ;;  %p1410_p12 = pneg %p1409_p11  ;;  %p1415_p10 = scmp.lt.s32.totalorder %s1413_s2, %s1407_s20 }
 0x12d   : > { %v724_v54 = vmul.f32 %v722_v37, %v721_v45  ;;  %v732_v57 = vmul.f32 %v730_v44, %v729_v50 }
 0x12e   : > { %v701_v39 = vadd.f32 %v699_v27, %v693_v32  ;;  %v702_v48 = vadd.f32 %v700_v35, %v694_v41  ;;  %p1416_p6 = por %p1415_p10, %p1414_p4 }
 0x130   : > { %v709_v46 = vadd.f32 %v707_v33, %v701_v39  ;;  %v710_v53 = vadd.f32 %v708_v42, %v702_v48  ;;  %p1417_p0 = pnand %p1416_p6, %p1410_p12 }
 0x132   : > { %v717_v51 = vadd.f32 %v715_v40, %v709_v46  ;;  %v718_v56 = vadd.f32 %v716_v49, %v710_v53 }
 0x134   : > { %v725_v55 = vadd.f32 %v723_v47, %v717_v51  ;;  %v726_v59 = vadd.f32 %v724_v54, %v718_v56 }
 0x136   : > { %v733_v58 = vadd.f32 %v731_v52, %v725_v55  ;;  %v734_v60 = vadd.f32 %v732_v57, %v726_v59 }
 0x138   : > { %735 = vst [vmem:[%s659_s25] sm:$0xff] %v733_v58  ;;  %736 = vst [vmem:[%s659_s25 + $0x8] sm:$0xff] %v734_v60 }
 0x139   : > { %1420 = shalt.err (!%p1417_p0)
}
 0x13a   : > { %s1421_s18 = scalar_lea.hbm %s2009_s28, 256  ;;  %s1425_s19 = scalar_lea.hbm %s2061_s10, 512 }
 0x13b   : > { %p1422_p1 = scmp.ne.s32.totalorder %s2009_s28, %s1421_s18  ;;  %p1426_p8 = scmp.lt.u32.totalorder %s2009_s28, %s2061_s10 }
 0x13c   : > { %p1427_p13 = scmp.lt.u32.totalorder %s1425_s19, %s1421_s18  ;;  %p1429_p2 = scmp.lt.u32.totalorder %s1421_s18, %s2009_s28 }
 0x13d   : > { %p1423_p7 = pnand %p1422_p1, %p2116_p9 }
 0x13e   : > { %p1428_p3 = por %p1427_p13, %p1426_p8 }
 0x13f   : > { %p1424_p5 = pneg %p1423_p7 }
 0x140   : > { %p1430_p11 = por %p1429_p2, %p1428_p3 }
 0x142   : > { %p1431_p12 = pnand %p1430_p11, %p1424_p5 }
 0x144   : > { %1434 = shalt.err (!%p1431_p12)
}
 0x145   : > { %1082 = dma.vmem_to_hbm [thread:$0]  (%p2116_p9), %s2004_s4, 256, %s2009_s28, %s738_s11  }
 0x146 PF: > { %s2117_s15 = sld [smem:[#allocation26_spill]]  ;;  %s2118_s16 = sld [smem:[#allocation31_spill]] }
 0x147   : > { %s2119_s23 = sld [smem:[#allocation28_spill]] }
 0x14c   : > { %s764_s22 = sand.u32 1, %s2117_s15   ;;  %p2120_p4 = scmp.ne.s32.totalorder %s2118_s16, 0 }
 0x14d   : > { %p2121_p10 = scmp.ge.s32.totalorder %s2119_s23, 2  ;;  %s765_s25 = scalar_lea.sflag [#allocation4], %s764_s22 }
 0x14f   : > { %p1114_p6 = pnand %p2121_p10, %p2120_p4 }
 0x151   : > { %1476 = dma.done.wait (!%p1114_p6), %s765_s25, 256  }
 0x152   : > { %1478 = vsyncadd (!%p1114_p6), %s765_s25, 4294967040  ;;  %s2122_s16 = sld [smem:[#allocation29_spill]]  ;;  %s2123_s17 = sld [smem:[#allocation27_spill]] }
 0x153   : > { %s2124_s15 = sld [smem:[#allocation30_spill]]  ;;  %s2125_s13 = smov %s1485_s14 }
 0x158   : > { %p36_p0 = scmp.ge.s32.totalorder %s2122_s16, 4   ;;  %s2126_s14 = smov %s2123_s17 }
 0x15a   :  { %38 = sbr.rel (!%p36_p0) target bundleno = 18 (0x12), region = 198 }
 0x161   :  { %770 = vsyncpa [#allocation3], 1 }
 0x162   :  { %772 = vsyncpa [#allocation3 + $0x1], 1 }
 0x163   :  { %773 = vsyncpa [#allocation8], 1 }
 0x164   :  { %775 = vsyncpa [#allocation8 + $0x1], 1 }
 0x165   :  { %776 = vsyncpa [#allocation11], 1 }
 0x166   :  { %778 = vsyncpa [#allocation11 + $0x1], 1 }
 0x167   :  { %779 = vsyncpa [#allocation14], 1 }
 0x168   :  { %781 = vsyncpa [#allocation14 + $0x1], 1 }
 0x169   :  { %782 = vsyncpa [#allocation17], 1 }
 0x16a   :  { %784 = vsyncpa [#allocation17 + $0x1], 1 }
 0x16b   :  { %785 = vsyncpa [#allocation4], 1 }
 0x16c   :  { %787 = vsyncpa [#allocation4 + $0x1], 1 }
 0x16d   :  { %788 = vsyncpa [#allocation5], 1 }
 0x16e   :  { %790 = vsyncpa [#allocation5 + $0x1], 1 }

</bundles_post_ra>
